<compile_context>
chip_gen: v6e
topology: v6e:2x2x1
jax: 0.10.0
libtpu: 0.0.40
codegen_flags: <defaults>
</compile_context>

<pallas_src>
import jax
import jax.numpy as jnp
from jax import lax
from jax.experimental import pallas as pl
from jax.experimental.pallas import tpu as pltpu

MAX_NORM = 1.0
RENORM_EPS = 1e-7  # torch.embedding_renorm_ epsilon (used by the reference)


def _cml_kernel(uid_ref, iid_ref, ut_ref, it_ref, o_ref):
    """Per-tile body.

    uid_ref, iid_ref : (1, TB) int32    ids for this batch tile
    ut_ref           : (D, NU)          user embedding table, transposed (VMEM resident)
    it_ref           : (D, NI)          item embedding table, transposed (VMEM resident)
    o_ref            : (1, TB) float32  -||u - v||^2, lane-dense
    """
    uid = uid_ref[...]                      # (1, TB)
    iid = iid_ref[...]
    ut = ut_ref[...]                        # (D, NU), native dtype (f32 or bf16)
    it = it_ref[...]

    nu = ut.shape[1]
    ni = it.shape[1]
    tb = uid.shape[1]

    # Fused gather: one-hot selection matrices (N, TB) consumed by the MXU.
    # TODO(synk): for tables too large to keep VMEM-resident, replace this
    # one-hot gather with a scalar-prefetch / id-driven DMA gather.
    u_sel = jnp.where(lax.broadcasted_iota(jnp.int32, (nu, tb), 0) == uid,
                      1.0, 0.0).astype(ut.dtype)
    v_sel = jnp.where(lax.broadcasted_iota(jnp.int32, (ni, tb), 0) == iid,
                      1.0, 0.0).astype(it.dtype)

    # (D, N) @ (N, TB) -> (D, TB): gathered embeddings with batch on lanes.
    u = jnp.dot(ut, u_sel, preferred_element_type=jnp.float32)
    v = jnp.dot(it, v_sel, preferred_element_type=jnp.float32)

    # nn.Embedding(max_norm=1): rescale columns whose L2 norm exceeds 1.
    # sumsq + rsqrt keeps the transcendental on the EUP; difference vs torch's
    # 1/(norm + 1e-7) form is O(1e-7) relative.
    u_ss = jnp.sum(u * u, axis=0, keepdims=True)          # (1, TB)
    v_ss = jnp.sum(v * v, axis=0, keepdims=True)
    u_scale = jnp.where(u_ss > MAX_NORM * MAX_NORM, MAX_NORM * lax.rsqrt(u_ss), 1.0)
    v_scale = jnp.where(v_ss > MAX_NORM * MAX_NORM, MAX_NORM * lax.rsqrt(v_ss), 1.0)

    d = u * u_scale - v * v_scale                         # (D, TB)
    o_ref[...] = -jnp.sum(d * d, axis=0, keepdims=True)   # lane-dense (1, TB)


def _round_up(x, m):
    return ((x + m - 1) // m) * m


def cml_forward(user_embeddings, item_embeddings, user_ids, item_ids, *, block_b=512):
    """Returns -||renorm(E_u[user_ids]) - renorm(E_i[item_ids])||^2, shape (B,)."""
    B = user_ids.shape[0]
    D = user_embeddings.shape[1]
    assert item_embeddings.shape[1] == D

    # Batch tile: multiple of 128 (lane axis), large enough to amortize per-step
    # overhead, small enough to fit comfortably in v7x's 64 MiB VMEM alongside
    # the resident tables.
    block_b = max(128, (block_b // 128) * 128)
    tb = min(block_b, _round_up(B, 128))
    b_pad = _round_up(B, tb)
    g = b_pad // tb

    uid = jnp.asarray(user_ids, jnp.int32)
    iid = jnp.asarray(item_ids, jnp.int32)
    if b_pad != B:
        uid = jnp.concatenate([uid, jnp.zeros((b_pad - B,), jnp.int32)])
        iid = jnp.concatenate([iid, jnp.zeros((b_pad - B,), jnp.int32)])
    uid = uid.reshape(g, tb)
    iid = iid.reshape(g, tb)

    # One-time transpose so the fused gather lands batch on the lane axis.
    ut = jnp.transpose(user_embeddings)   # (D, NU)
    it = jnp.transpose(item_embeddings)   # (D, NI)
    nu, ni = ut.shape[1], it.shape[1]

    out = pl.pallas_call(
        _cml_kernel,
        out_shape=jax.ShapeDtypeStruct((g, tb), jnp.float32),
        grid_spec=pltpu.PrefetchScalarGridSpec(
            num_scalar_prefetch=0,
            grid=(g,),
            in_specs=[
                pl.BlockSpec((1, tb), lambda i: (i, 0)),   # user id tile
                pl.BlockSpec((1, tb), lambda i: (i, 0)),   # item id tile
                pl.BlockSpec((D, nu), lambda i: (0, 0)),   # user table (resident)
                pl.BlockSpec((D, ni), lambda i: (0, 0)),   # item table (resident)
            ],
            out_specs=pl.BlockSpec((1, tb), lambda i: (i, 0)),
        ),
        compiler_params=pltpu.CompilerParams(
            dimension_semantics=("parallel",),       # shards batch tiles across TCs on v7x
            vmem_limit_bytes=48 * 1024 * 1024,       # above 16/32 MiB scoped defaults
        ),
    )(uid, iid, ut, it)

    return out.reshape(-1)[:B]


def reference_forward(user_embeddings, item_embeddings, user_ids, item_ids):
    """Exact torch semantics in plain JAX (gather, max_norm renorm, -dist^2)."""
    u = jnp.take(user_embeddings, user_ids, axis=0).astype(jnp.float32)
    v = jnp.take(item_embeddings, item_ids, axis=0).astype(jnp.float32)
    un = jnp.linalg.norm(u, axis=1, keepdims=True)
    vn = jnp.linalg.norm(v, axis=1, keepdims=True)
    u = jnp.where(un > MAX_NORM, u * (MAX_NORM / (un + RENORM_EPS)), u)
    v = jnp.where(vn > MAX_NORM, v * (MAX_NORM / (vn + RENORM_EPS)), v)
    return -jnp.sum((u - v) ** 2, axis=1)


if __name__ == "__main__":
    def run_case(num_users, num_items, embedding_dim, batch, block_b, key):
        k_u, k_i, k_uid, k_iid = jax.random.split(key, 4)
        user_emb = jax.random.normal(k_u, (num_users, embedding_dim), dtype=jnp.float32)
        item_emb = jax.random.normal(k_i, (num_items, embedding_dim), dtype=jnp.float32)
        user_ids = jax.random.randint(k_uid, (batch,), 0, num_users, dtype=jnp.int32)
        item_ids = jax.random.randint(k_iid, (batch,), 0, num_items, dtype=jnp.int32)

        out = jax.block_until_ready(
            cml_forward(user_emb, item_emb, user_ids, item_ids, block_b=block_b))
        ref = reference_forward(user_emb, item_emb, user_ids, item_ids)
        assert out.shape == (batch,)
        assert jnp.allclose(out, ref, atol=1e-4, rtol=1e-4), (out, ref)

    key = jax.random.PRNGKey(0)
    k0, k1 = jax.random.split(key)
    # Small shapes matching the module defaults (embedding_dim=32).
    run_case(num_users=16, num_items=24, embedding_dim=32, batch=8, block_b=512, key=k0)
    # Multi-tile grid + padded tail (grid > 1 exercises pipelining / megacore path).
    run_case(num_users=40, num_items=56, embedding_dim=32, batch=300, block_b=128, key=k1)

    print("KERNEL_OK")
</pallas_src>

<mosaic_0001>
module attributes {stable_mosaic.version = 11 : i64} {
  func.func @_cml_kernel(%arg0: i32, %arg1: memref<1x128xi32, #tpu.memory_space<vmem>>, %arg2: memref<1x128xi32, #tpu.memory_space<vmem>>, %arg3: memref<32x16xf32, #tpu.memory_space<vmem>>, %arg4: memref<32x24xf32, #tpu.memory_space<vmem>>, %arg5: memref<1x128xf32, #tpu.memory_space<vmem>>) attributes {dimension_semantics = [#tpu.dimension_semantics<parallel>], iteration_bounds = array<i64: 1>, scalar_prefetch = 0 : i64, scratch_operands = 0 : i64, tpu.core_type = #tpu.core_type<tc>, window_params = [{transform_indices = @transform_0, window_bounds = array<i64: 1, 128>}, {transform_indices = @transform_1, window_bounds = array<i64: 1, 128>}, {pipeline_mode = #tpu.pipeline_mode<synchronous>, transform_indices = @transform_2, window_bounds = array<i64: 32, 16>}, {pipeline_mode = #tpu.pipeline_mode<synchronous>, transform_indices = @transform_3, window_bounds = array<i64: 32, 24>}, {transform_indices = @transform_4, window_bounds = array<i64: 1, 128>}]} {
    %c0 = arith.constant 0 : index
    %c0_0 = arith.constant 0 : index
    %0 = vector.load %arg1[%c0, %c0_0] : memref<1x128xi32, #tpu.memory_space<vmem>>, vector<1x128xi32>
    %c0_1 = arith.constant 0 : index
    %c0_2 = arith.constant 0 : index
    %1 = vector.load %arg2[%c0_1, %c0_2] : memref<1x128xi32, #tpu.memory_space<vmem>>, vector<1x128xi32>
    %c0_3 = arith.constant 0 : index
    %c0_4 = arith.constant 0 : index
    %2 = vector.load %arg3[%c0_3, %c0_4] : memref<32x16xf32, #tpu.memory_space<vmem>>, vector<32x16xf32>
    %c0_5 = arith.constant 0 : index
    %c0_6 = arith.constant 0 : index
    %3 = vector.load %arg4[%c0_5, %c0_6] : memref<32x24xf32, #tpu.memory_space<vmem>>, vector<32x24xf32>
    %4 = tpu.iota {dimensions = array<i32: 0>} : vector<16x128xi32>
    %5 = vector.broadcast %0 : vector<1x128xi32> to vector<16x128xi32>
    %6 = arith.cmpi eq, %4, %5 : vector<16x128xi32>
    %cst = arith.constant 1.000000e+00 : f32
    %cst_7 = arith.constant 0.000000e+00 : f32
    %7 = vector.broadcast %cst : f32 to vector<16x128xf32>
    %8 = vector.broadcast %cst_7 : f32 to vector<16x128xf32>
    %9 = arith.select %6, %7, %8 : vector<16x128xi1>, vector<16x128xf32>
    %10 = tpu.iota {dimensions = array<i32: 0>} : vector<24x128xi32>
    %11 = vector.broadcast %1 : vector<1x128xi32> to vector<24x128xi32>
    %12 = arith.cmpi eq, %10, %11 : vector<24x128xi32>
    %cst_8 = arith.constant 1.000000e+00 : f32
    %cst_9 = arith.constant 0.000000e+00 : f32
    %13 = vector.broadcast %cst_8 : f32 to vector<24x128xf32>
    %14 = vector.broadcast %cst_9 : f32 to vector<24x128xf32>
    %15 = arith.select %12, %13, %14 : vector<24x128xi1>, vector<24x128xf32>
    %cst_10 = arith.constant dense<0.000000e+00> : vector<32x128xf32>
    %16 = tpu.matmul %2, %9, %cst_10 {dimension_numbers = #tpu.dot_dimension_numbers<[1], [0], [0], [1], [0, 0, 1, 1], [], []>} : vector<32x16xf32>, vector<16x128xf32>, vector<32x128xf32> -> vector<32x128xf32>
    %cst_11 = arith.constant dense<0.000000e+00> : vector<32x128xf32>
    %17 = tpu.matmul %3, %15, %cst_11 {dimension_numbers = #tpu.dot_dimension_numbers<[1], [0], [0], [1], [0, 0, 1, 1], [], []>} : vector<32x24xf32>, vector<24x128xf32>, vector<32x128xf32> -> vector<32x128xf32>
    %18 = arith.mulf %16, %16 : vector<32x128xf32>
    %cst_12 = arith.constant dense<0.000000e+00> : vector<128xf32>
    %19 = vector.multi_reduction <add>, %18, %cst_12 [0] : vector<32x128xf32> to vector<128xf32>
    %20 = vector.shape_cast %19 : vector<128xf32> to vector<1x128xf32>
    %21 = arith.mulf %17, %17 : vector<32x128xf32>
    %cst_13 = arith.constant dense<0.000000e+00> : vector<128xf32>
    %22 = vector.multi_reduction <add>, %21, %cst_13 [0] : vector<32x128xf32> to vector<128xf32>
    %23 = vector.shape_cast %22 : vector<128xf32> to vector<1x128xf32>
    %cst_14 = arith.constant 1.000000e+00 : f32
    %24 = vector.broadcast %cst_14 : f32 to vector<1x128xf32>
    %25 = arith.cmpf ogt, %20, %24 : vector<1x128xf32>
    %26 = math.rsqrt %20 : vector<1x128xf32>
    %cst_15 = arith.constant 1.000000e+00 : f32
    %27 = vector.broadcast %cst_15 : f32 to vector<1x128xf32>
    %28 = arith.mulf %27, %26 : vector<1x128xf32>
    %cst_16 = arith.constant 1.000000e+00 : f32
    %29 = vector.broadcast %cst_16 : f32 to vector<1x128xf32>
    %30 = arith.select %25, %28, %29 : vector<1x128xi1>, vector<1x128xf32>
    %cst_17 = arith.constant 1.000000e+00 : f32
    %31 = vector.broadcast %cst_17 : f32 to vector<1x128xf32>
    %32 = arith.cmpf ogt, %23, %31 : vector<1x128xf32>
    %33 = math.rsqrt %23 : vector<1x128xf32>
    %cst_18 = arith.constant 1.000000e+00 : f32
    %34 = vector.broadcast %cst_18 : f32 to vector<1x128xf32>
    %35 = arith.mulf %34, %33 : vector<1x128xf32>
    %cst_19 = arith.constant 1.000000e+00 : f32
    %36 = vector.broadcast %cst_19 : f32 to vector<1x128xf32>
    %37 = arith.select %32, %35, %36 : vector<1x128xi1>, vector<1x128xf32>
    %38 = vector.broadcast %30 : vector<1x128xf32> to vector<32x128xf32>
    %39 = arith.mulf %16, %38 : vector<32x128xf32>
    %40 = vector.broadcast %37 : vector<1x128xf32> to vector<32x128xf32>
    %41 = arith.mulf %17, %40 : vector<32x128xf32>
    %42 = arith.subf %39, %41 : vector<32x128xf32>
    %43 = arith.mulf %42, %42 : vector<32x128xf32>
    %cst_20 = arith.constant dense<0.000000e+00> : vector<128xf32>
    %44 = vector.multi_reduction <add>, %43, %cst_20 [0] : vector<32x128xf32> to vector<128xf32>
    %45 = vector.shape_cast %44 : vector<128xf32> to vector<1x128xf32>
    %cst_21 = arith.constant 0.000000e+00 : f32
    %46 = vector.broadcast %cst_21 : f32 to vector<1x128xf32>
    %47 = arith.subf %46, %45 : vector<1x128xf32>
    %c0_22 = arith.constant 0 : index
    %c0_23 = arith.constant 0 : index
    %48 = vector.load %arg5[%c0_22, %c0_23] : memref<1x128xf32, #tpu.memory_space<vmem>>, vector<1x128xf32>
    tpu.vector_store %arg5[%c0_22, %c0_23], %47 {strides = array<i32>} : memref<1x128xf32, #tpu.memory_space<vmem>>, vector<1x128xf32>,
    return
  }
  func.func @transform_0(%arg0: i32) -> (i32, i32) {
    %c0_i32 = arith.constant 0 : i32
    %c0_i32_0 = arith.constant 0 : i32
    return %arg0, %c0_i32 : i32, i32
  }
  func.func @transform_1(%arg0: i32) -> (i32, i32) {
    %c0_i32 = arith.constant 0 : i32
    %c0_i32_0 = arith.constant 0 : i32
    return %arg0, %c0_i32 : i32, i32
  }
  func.func @transform_2(%arg0: i32) -> (i32, i32) {
    %c0_i32 = arith.constant 0 : i32
    %c0_i32_0 = arith.constant 0 : i32
    %c0_i32_1 = arith.constant 0 : i32
    return %c0_i32, %c0_i32_0 : i32, i32
  }
  func.func @transform_3(%arg0: i32) -> (i32, i32) {
    %c0_i32 = arith.constant 0 : i32
    %c0_i32_0 = arith.constant 0 : i32
    %c0_i32_1 = arith.constant 0 : i32
    return %c0_i32, %c0_i32_0 : i32, i32
  }
  func.func @transform_4(%arg0: i32) -> (i32, i32) {
    %c0_i32 = arith.constant 0 : i32
    %c0_i32_0 = arith.constant 0 : i32
    return %arg0, %c0_i32 : i32, i32
  }
}

</mosaic_0001>

<bundles_post_ra>
// kernel: tpu_custom_call.1
= control target key start
LH: loop header
LB: loop body
LE: loop exit
PB: predicated region body
PF: predicated region fallthrough
CT: control target
= control target key end

     0   :  { %v28_v0 = vlaneseq  ;;  %vm50_vm0 = vcmask 130048   ;;  %vm148_vm1 = vcmask 195584   ;;  %s465_s0 = inlined_call_operand.vmem [shape: s32[1,128], index: 0, kind: input, shape index: {}]   ;;  %s466_s1 = inlined_call_operand.vmem [shape: s32[1,128], index: 1, kind: input, shape index: {}]   ;;  %s467_s2 = inlined_call_operand.vmem [shape: f32[32,16], index: 2, kind: input, shape index: {}]   ;;  %s468_s3 = inlined_call_operand.vmem [shape: f32[32,24], index: 3, kind: input, shape index: {}]   ;;  %s469_s4 = inlined_call_operand.hbm [shape: f32[1,128], index: 4, kind: output, shape index: {}]  }
   0x1   :  { %v20_v1 = vld [vmem:[%s467_s2] sm:$0xff] }
   0x2   :  { %v24_v2 = vld [vmem:[%s468_s3] sm:$0xff]  ;;  %v29_v3 = vshrl.u32 %v28_v0, 7  ;;  %351 = vmatprep.mubr.msk.f32.mxu0 %vm50_vm0, %v20_v1 }
   0x3   :  { %363 = vmatprep.mubr.msk.f32.mxu1 %vm148_vm1, %v24_v2  ;;  %v319_v4 = vld [vmem:[%s465_s0] ss:$0 sm:$0xff] }
   0x4   :  { %v320_v5 = vld [vmem:[%s466_s1] ss:$0 sm:$0xff] }
   0x5   :  { %9 = vsyncpa [#allocation3], 0  ;;  %v30_v6 = vadd.s32 8, %v29_v3  ;;  %v39_v7 = vadd.s32 16, %v29_v3  ;;  %vm35_vm2 = vcmp.eq.s32.totalorder %v29_v3, %v319_v4  ;;  %v397_v8 = vmov 1.0   ;;  %v21_v9 = vld [vmem:[%s467_s2 + $0x8] sm:$0xff] }
   0x6   :  { %vm44_vm6 = vcmp.eq.s32.totalorder %v29_v3, %v320_v5  ;;  %v22_v10 = vld [vmem:[%s467_s2 + $0x10] sm:$0xff]  ;;  %v25_v11 = vld [vmem:[%s468_s3 + $0x8] sm:$0xff]  ;;  %v23_v13 = vld [vmem:[%s467_s2 + $0x18] sm:$0xff]  ;;  %s398_s2 = smov [#allocation2]  }
   0x7   :  { %vm36_vm3 = vcmp.eq.s32.totalorder %v30_v6, %v319_v4  ;;  %vm46_vm4 = vcmp.eq.s32.totalorder %v39_v7, %v320_v5  ;;  %vm45_vm5 = vcmp.eq.s32.totalorder %v30_v6, %v320_v5  ;;  %v26_v12 = vld [vmem:[%s468_s3 + $0x10] sm:$0xff]  ;;  %v27_v14 = vld [vmem:[%s468_s3 + $0x18] sm:$0xff]  ;;  %s311_s3 = sshll.u32 %s398_s2, 4  ;;  %s312_s3 = int_to_ptr.vmem [resolvable:$true] %s311_s3 }
   0x8   :  { %347 = vmatprep.subr.msk.mxu0 %vm36_vm3, %v397_v8  ;;  %357 = vmatprep.subr.msk.mxu1 %vm46_vm4, %v397_v8  ;;  %s375_s7 = scalar_lea.vmem %s312_s3, 16  ;;  %s379_s8 = scalar_lea.vmem %s312_s3, 32 }
   0x9   :  { %348 = vmatpush3.msk.msra.mxu0 %vm36_vm3, %v397_v8  ;;  %358 = vmatpush3.msk.msra.mxu1 %vm46_vm4, %v397_v8  ;;  %p376_p0 = scmp.ne.s32.totalorder %s312_s3, %s375_s7  ;;  %p380_p1 = scmp.lt.s32.totalorder %s312_s3, %s312_s3 }
   0xa   :  { %349 = vmatprep.subr.msk.mxu0 %vm35_vm2, %v397_v8  ;;  %359 = vmatprep.subr.msk.mxu1 %vm45_vm5, %v397_v8  ;;  %p381_p2 = scmp.lt.s32.totalorder %s379_s8, %s375_s7 }
   0xb   :  { %350 = vmatpush3.msk.msra.mxu0 %vm35_vm2, %v397_v8  ;;  %360 = vmatpush3.msk.msra.mxu1 %vm45_vm5, %v397_v8 }
   0xc   :  { %352 = vmatmul.mubr.msk.f32.vlgmr.msra.gmra.mxu0 %vm50_vm0, %v21_v9  ;;  %361 = vmatprep.subr.msk.mxu1 %vm44_vm6, %v397_v8  ;;  %p382_p3 = por %p381_p2, %p380_p1 }
   0xd   :  { %362 = vmatpush3.msk.msra.mxu1 %vm44_vm6, %v397_v8  ;;  %354 = vmatprep.mubr.msk.f32.mxu0 %vm50_vm0, %v22_v10 }
   0xe   :  { %364 = vmatmul.mubr.msk.f32.vlgmr.msra.gmra.mxu1 %vm148_vm1, %v25_v11  ;;  %p383_p4 = pnand %p382_p3, %p376_p0 }
   0xf   :  { %366 = vmatprep.mubr.msk.f32.mxu1 %vm148_vm1, %v26_v12 }
  0x10   :  { %355 = vmatmul.mubr.msk.f32.gmra.mxu0 %vm50_vm0, %v23_v13 }
  0x12   :  { %367 = vmatmul.mubr.msk.f32.gmra.mxu1 %vm148_vm1, %v27_v14 }
  0xcc   :  { %v353_v15 = vpop.f32.mrf.mxu0 }
  0xcd   :  { %v247_v18 = vmul.f32 %v353_v15, %v353_v15 }
  0xce   :  { %v129_v16 = vpop.f32.mrf.mxu0  ;;  %v365_v17 = vpop.f32.mrf.mxu1 }
  0xcf   :  { %v246_v19 = vmul.f32 %v129_v16, %v129_v16  ;;  %v260_v26 = vmul.f32 %v365_v17, %v365_v17 }
  0xd0   :  { %v356_v20 = vpop.f32.mrf.mxu0  ;;  %v227_v21 = vpop.f32.mrf.mxu1 }
  0xd1   :  { %v259_v22 = vmul.f32 %v227_v21, %v227_v21  ;;  %v250_v25 = vadd.f32 %v247_v18, %v246_v19  ;;  %v249_v29 = vmul.f32 %v356_v20, %v356_v20 }
  0xd2   :  { %v139_v23 = vpop.f32.mrf.mxu0  ;;  %v368_v24 = vpop.f32.mrf.mxu1 }
  0xd3   :  { %v248_v27 = vmul.f32 %v139_v23, %v139_v23  ;;  %v263_v30 = vadd.f32 %v260_v26, %v259_v22  ;;  %v262_v34 = vmul.f32 %v368_v24, %v368_v24 }
  0xd4   :  { %v237_v28 = vpop.f32.mrf.mxu1 }
  0xd5   :  { %v251_v31 = vadd.f32 %v250_v25, %v248_v27  ;;  %v261_v32 = vmul.f32 %v237_v28, %v237_v28 }
  0xd7   :  { %v252_v33 = vadd.f32 %v251_v31, %v249_v29  ;;  %v264_v35 = vadd.f32 %v263_v30, %v261_v32 }
  0xd9   :  { %v253_v36 = vrot.slane %v252_v33, 4  ;;  %v265_v37 = vadd.f32 %v264_v35, %v262_v34 }
  0xdb   :  { %v254_v38 = vadd.f32 %v253_v36, %v252_v33  ;;  %v266_v39 = vrot.slane %v265_v37, 4 }
  0xdd   :  { %v255_v40 = vrot.slane %v254_v38, 2  ;;  %v267_v41 = vadd.f32 %v266_v39, %v265_v37 }
  0xdf   :  { %v256_v42 = vadd.f32 %v255_v40, %v254_v38  ;;  %v268_v43 = vrot.slane %v267_v41, 2 }
  0xe1   :  { %v257_v44 = vrot.slane %v256_v42, 1  ;;  %v269_v45 = vadd.f32 %v268_v43, %v267_v41 }
  0xe3   :  { %v258_v46 = vadd.f32 %v257_v44, %v256_v42  ;;  %v270_v47 = vrot.slane %v269_v45, 1 }
  0xe5   :  { %371 = vrsqrt.f32 %v258_v46  ;;  %v271_v48 = vadd.f32 %v270_v47, %v269_v45  ;;  %vm272_vm7 = vcmp.gt.f32.partialorder %v258_v46, 1.0 }
  0xe7   :  { %373 = vrsqrt.f32 %v271_v48  ;;  %vm275_vm8 = vcmp.gt.f32.partialorder %v271_v48, 1.0 }
  0xf2   :  { %v372_v49 = vpop.eup %371 }
  0xf3   :  { %v274_v50 = vsel %vm272_vm7, %v372_v49, 1.0 }
  0xf4   :  { %v374_v51 = vpop.eup %373  ;;  %v278_v52 = vmul.f32 %v274_v50, %v129_v16  ;;  %v279_v53 = vmul.f32 %v353_v15, %v274_v50  ;;  %v280_v54 = vmul.f32 %v274_v50, %v139_v23  ;;  %v281_v60 = vmul.f32 %v356_v20, %v274_v50 }
  0xf5   :  { %v277_v55 = vsel %vm275_vm8, %v374_v51, 1.0 }
  0xf6   :  { %v282_v56 = vmul.f32 %v277_v55, %v227_v21  ;;  %v283_v57 = vmul.f32 %v365_v17, %v277_v55  ;;  %v284_v58 = vmul.f32 %v277_v55, %v237_v28  ;;  %v285_v59 = vmul.f32 %v368_v24, %v277_v55 }
  0xf8   :  { %v286_v61 = vsub.f32 %v278_v52, %v282_v56  ;;  %v287_v62 = vsub.f32 %v279_v53, %v283_v57  ;;  %v288_v63 = vsub.f32 %v280_v54, %v284_v58  ;;  %v289_v0 = vsub.f32 %v281_v60, %v285_v59 }
  0xfa   :  { %v290_v1 = vmul.f32 %v286_v61, %v286_v61  ;;  %v291_v2 = vmul.f32 %v287_v62, %v287_v62  ;;  %v292_v3 = vmul.f32 %v288_v63, %v288_v63  ;;  %v293_v5 = vmul.f32 %v289_v0, %v289_v0 }
  0xfc   :  { %v294_v4 = vadd.f32 %v291_v2, %v290_v1 }
  0xfe   :  { %v295_v6 = vadd.f32 %v294_v4, %v292_v3 }
 0x100   :  { %v296_v7 = vadd.f32 %v295_v6, %v293_v5 }
 0x102   :  { %v297_v8 = vrot.slane %v296_v7, 4 }
 0x104   :  { %v298_v9 = vadd.f32 %v297_v8, %v296_v7 }
 0x106   :  { %v299_v10 = vrot.slane %v298_v9, 2 }
 0x108   :  { %v300_v11 = vadd.f32 %v299_v10, %v298_v9 }
 0x10a   :  { %v301_v12 = vrot.slane %v300_v11, 1 }
 0x10c   :  { %v302_v13 = vadd.f32 %v301_v12, %v300_v11 }
 0x10e   :  { %v303_v14 = vsub.f32 0.0, %v302_v13 }
 0x110   :  { %304 = vst [vmem:[#allocation2] sm:$0x1] %v303_v14 }
 0x111   :  { %386 = shalt.err (!%p383_p4)
}
 0x112   :  { %314 = dma.vmem_to_hbm [thread:$0]  %s312_s3, 16, %s469_s4, [#allocation3]  }
 0x113   :  { %395 = dma.done.wait [#allocation3], 16  }
 0x114   :  { %396 = vsyncadd [#allocation3], 4294967280 }
 0x115   :  { %318 = vsyncpa [#allocation3], 1 }

</bundles_post_ra>
